<compile_context>
chip_gen: v5e
topology: v5e:2x2
jax: 0.10.0
libtpu: 0.0.40
codegen_flags: <defaults>
</compile_context>

<pallas_src>
import functools

import jax
import jax.numpy as jnp
from jax.experimental import pallas as pl
from jax.experimental.pallas import tpu as pltpu

LANES = 128
ROW_ALIGN = 32      # multi-block tile_r alignment (covers int8 labels' (32,128) tile)
CHUNK_R = 32        # rows per register-resident inner chunk (4 f32 vregs wide)
MAX_TILE_R = 4096   # rows per grid step; <= ~8 MiB double-buffered (f32 logits + i32 labels)


def _focal_factor(q, gamma):
    """q**gamma with q in [0, 1], specialized to avoid extra EUP log+exp."""
    def ipow(v, k):
        acc, base = None, v
        while k:
            if k & 1:
                acc = base if acc is None else acc * base
            k >>= 1
            if k:
                base = base * base
        return acc

    if gamma == 0.0:
        return jnp.ones_like(q)
    if float(gamma).is_integer() and 1.0 <= gamma <= 8.0:
        return ipow(q, int(gamma))                       # gamma=2 -> q*q (no EUP)
    if float(2.0 * gamma).is_integer() and 0.0 < gamma <= 8.0:
        k = int(2.0 * gamma)                             # odd half-integer
        root = jnp.sqrt(q)
        return root if k == 1 else ipow(q, k // 2) * root
    return jnp.power(q, jnp.float32(gamma))              # generic fallback (log+exp)


def _focal_partial_kernel(x_ref, lb_ref, out_ref, *, alpha, gamma, tile_r, valid_in_last):
    """Sum of sigmoid focal loss over this (tile_r, 128) block -> (8, 128) partial."""
    n_chunks = tile_r // CHUNK_R
    rem = tile_r % CHUNK_R            # wrapper guarantees rem % 8 == 0

    def chunk_partial(r0, nrows, valid):
        x = x_ref[pl.ds(r0, nrows), :].astype(jnp.float32)
        is_pos = lb_ref[pl.ds(r0, nrows), :] == 1        # integer compare
        # Stable log(sigmoid(x)) / log(1 - sigmoid(x)) -- 3 EUP ops/element total
        # (exp, log1p here + exp for q below), matching the PyTorch softplus form.
        sp = jnp.log1p(jnp.exp(-jnp.abs(x)))
        log_p = jnp.where(x >= 0.0, -sp, x - sp)
        log_1p = log_p - x                               # identity: log(1-p) = log(p) - x
        sel_log = jnp.where(is_pos, log_p, log_1p)
        q = jnp.exp(jnp.where(is_pos, log_1p, log_p))    # = 1-p (pos) / p (neg), no 1-p cancel
        neg_coeff = jnp.where(is_pos, jnp.float32(-alpha), jnp.float32(alpha - 1.0))
        loss = neg_coeff * _focal_factor(q, gamma) * sel_log
        if valid is not None:
            # Select (not multiply) so NaN/Inf garbage in padded / partial-DMA rows
            # is dropped rather than propagated.
            row = jax.lax.broadcasted_iota(jnp.int32, (nrows, LANES), 0)
            col = jax.lax.broadcasted_iota(jnp.int32, (nrows, LANES), 1)
            idx = (r0 + row) * LANES + col
            loss = jnp.where(idx < valid, loss, 0.0)
        # Pairwise tree over 8-row slabs -> (8, LANES); pure aligned VPU adds.
        slabs = [loss[i * 8:(i + 1) * 8, :] for i in range(nrows // 8)]
        while len(slabs) > 1:
            nxt = [slabs[i] + slabs[i + 1] for i in range(0, len(slabs) - 1, 2)]
            if len(slabs) % 2:
                nxt.append(slabs[-1])
            slabs = nxt
        return slabs[0]

    def accumulate(valid):
        acc = jnp.zeros((8, LANES), jnp.float32)
        if n_chunks > 0:
            def body(c, a):
                r0 = pl.multiple_of(c * CHUNK_R, CHUNK_R)
                return a + chunk_partial(r0, CHUNK_R, valid)
            unroll = True if n_chunks <= 8 else 2
            acc = jax.lax.fori_loop(0, n_chunks, body, acc, unroll=unroll)
        if rem:
            acc = acc + chunk_partial(n_chunks * CHUNK_R, rem, valid)
        return acc

    if valid_in_last >= tile_r * LANES:
        # Evenly divided and no padding anywhere: no masking on any step.
        out_ref[...] = accumulate(None)
    else:
        last = pl.num_programs(0) - 1

        @pl.when(pl.program_id(0) != last)
        def _():
            out_ref[...] = accumulate(None)

        @pl.when(pl.program_id(0) == last)
        def _():
            out_ref[...] = accumulate(valid_in_last)


def focal_loss_v2(logits, label, alpha=0.25, gamma=2.0, reduction="mean"):
    """JAX/Pallas equivalent of FocalLossV2.forward (reduction 'mean' or 'sum')."""
    assert logits.shape == label.shape, "label must match logits' shape elementwise"
    n = logits.size
    assert n > 0

    x = logits.reshape(-1)                 # native dtype (f32 / bf16); cast in-kernel
    lb = label
    if lb.dtype == jnp.bool_:
        lb = lb.astype(jnp.int8)           # 1-byte stream
    elif lb.dtype.itemsize > 4:
        lb = lb.astype(jnp.int32)          # int64 labels (only with x64 enabled)
    lb = lb.reshape(-1)

    # Lane-dense layout: rows x 128.  Large aligned inputs stream with zero
    # wrapper copies; only a <=127-element ragged tail (or a tiny-input sublane
    # round-up) is ever padded, and those elements are dropped in-kernel.
    rows = pl.cdiv(n, LANES)
    tiny = rows <= 2 * ROW_ALIGN
    if tiny:
        rows = ((rows + 7) // 8) * 8       # single full-extent block, 8-row slabs
        tile_r = rows
    else:
        # grid >= 2 so both v7x TensorCores get work; blocks up to MAX_TILE_R rows.
        half = pl.cdiv(rows, 2)
        tile_r = min(MAX_TILE_R, ((half + ROW_ALIGN - 1) // ROW_ALIGN) * ROW_ALIGN)
    total_pad = rows * LANES - n
    if total_pad:
        # TODO(synk): stream the ragged tail via a separate tiny block to avoid this copy.
        x = jnp.pad(x, (0, total_pad))
        lb = jnp.pad(lb, (0, total_pad))

    grid = pl.cdiv(rows, tile_r)
    valid_in_last = int(n - (grid - 1) * tile_r * LANES)   # elements valid in last block
    assert 0 < valid_in_last <= tile_r * LANES
    assert tile_r % 8 == 0

    x2 = x.reshape(rows, LANES)
    lb2 = lb.reshape(rows, LANES)

    kernel = functools.partial(
        _focal_partial_kernel,
        alpha=float(alpha), gamma=float(gamma),
        tile_r=tile_r, valid_in_last=valid_in_last,
    )

    partials = pl.pallas_call(
        kernel,
        out_shape=jax.ShapeDtypeStruct((grid * 8, LANES), jnp.float32),
        grid_spec=pltpu.PrefetchScalarGridSpec(
            num_scalar_prefetch=0,
            grid=(grid,),
            in_specs=[
                # TODO(synk): on v5e, try pipeline_mode=pl.Buffered(3) on the logits
                # spec if a trace shows exposed DMA (kernel is HBM-bound there).
                pl.BlockSpec((tile_r, LANES), lambda i: (i, 0)),
                pl.BlockSpec((tile_r, LANES), lambda i: (i, 0)),
            ],
            out_specs=pl.BlockSpec((8, LANES), lambda i: (i, 0)),
        ),
        compiler_params=pltpu.CompilerParams(
            dimension_semantics=("parallel",),   # independent partials -> megacore on v7x
        ),
    )(x2, lb2)

    total = jnp.sum(partials)                   # tiny (grid*8, 128) reduce in XLA
    if reduction == "mean":
        return total / jnp.float32(n)
    if reduction == "sum":
        return total
    # TODO(synk): reduction='none' needs an elementwise-output kernel variant.
    raise NotImplementedError("only 'mean' and 'sum' reductions are implemented")


def _reference(logits, label, alpha=0.25, gamma=2.0, reduction="mean"):
    x = logits.astype(jnp.float32)
    coeff = jnp.where(label == 1, alpha, 1.0 - alpha)
    p = jax.nn.sigmoid(x)
    sp = jnp.log1p(jnp.exp(-jnp.abs(x)))
    log_p = jnp.where(x >= 0, -sp, x - sp)
    log_1p = jnp.where(x >= 0, -x - sp, -sp)
    t1 = (1.0 - p) ** gamma * log_p
    t2 = p ** gamma * log_1p
    loss = -coeff * jnp.where(label == 1, t1, t2)
    return loss.mean() if reduction == "mean" else loss.sum()


if __name__ == "__main__":
    key = jax.random.PRNGKey(0)
    k1, k2, k3, k4, k5, k6 = jax.random.split(key, 6)

    # 1) Aligned NCHW, mean reduction (unmasked single-block path).
    B, C, H, W = 2, 4, 16, 16
    logits = jax.random.normal(k1, (B, C, H, W), dtype=jnp.float32) * 3.0
    label = jax.random.bernoulli(k2, p=0.3, shape=(B, C, H, W)).astype(jnp.int32)
    loss = jax.block_until_ready(focal_loss_v2(logits, label, 0.25, 2.0, "mean"))
    ref = _reference(logits, label, 0.25, 2.0, "mean")
    assert jnp.allclose(loss, ref, rtol=1e-5, atol=5e-6), (loss, ref)

    # 2) Ragged shape, sum reduction (flat pad + in-kernel valid mask path).
    shape2 = (3, 5, 7, 11)
    logits2 = jax.random.normal(k3, shape2, dtype=jnp.float32) * 3.0
    label2 = jax.random.bernoulli(k4, p=0.3, shape=shape2).astype(jnp.int32)
    loss2 = jax.block_until_ready(focal_loss_v2(logits2, label2, 0.25, 2.0, "sum"))
    ref2 = _reference(logits2, label2, 0.25, 2.0, "sum")
    assert jnp.allclose(loss2, ref2, rtol=1e-5, atol=1e-4), (loss2, ref2)

    # 3) Larger aligned input (multi-block grid + chunked fori_loop path).
    shape3 = (2, 4, 64, 64)
    logits3 = jax.random.normal(k5, shape3, dtype=jnp.float32) * 3.0
    label3 = jax.random.bernoulli(k6, p=0.3, shape=shape3).astype(jnp.int32)
    loss3 = jax.block_until_ready(focal_loss_v2(logits3, label3, 0.25, 2.0, "mean"))
    ref3 = _reference(logits3, label3, 0.25, 2.0, "mean")
    assert jnp.allclose(loss3, ref3, rtol=1e-5, atol=5e-6), (loss3, ref3)

    print("KERNEL_OK")
</pallas_src>

<mosaic_0001>
module attributes {stable_mosaic.version = 11 : i64} {
  func.func @_focal_partial_kernel(%arg0: i32, %arg1: memref<16x128xf32, #tpu.memory_space<vmem>>, %arg2: memref<16x128xi32, #tpu.memory_space<vmem>>, %arg3: memref<8x128xf32, #tpu.memory_space<vmem>>) attributes {dimension_semantics = [#tpu.dimension_semantics<parallel>], iteration_bounds = array<i64: 1>, scalar_prefetch = 0 : i64, scratch_operands = 0 : i64, tpu.core_type = #tpu.core_type<tc>, window_params = [{transform_indices = @transform_0, window_bounds = array<i64: 16, 128>}, {transform_indices = @transform_1, window_bounds = array<i64: 16, 128>}, {transform_indices = @transform_2, window_bounds = array<i64: 8, 128>}]} {
    %cst = arith.constant 0.000000e+00 : f32
    %0 = vector.broadcast %cst : f32 to vector<8x128xf32>
    %c0 = arith.constant 0 : index
    %c0_0 = arith.constant 0 : index
    %1 = vector.load %arg1[%c0, %c0_0] : memref<16x128xf32, #tpu.memory_space<vmem>>, vector<16x128xf32>
    %c0_1 = arith.constant 0 : index
    %c0_2 = arith.constant 0 : index
    %2 = vector.load %arg2[%c0_1, %c0_2] : memref<16x128xi32, #tpu.memory_space<vmem>>, vector<16x128xi32>
    %c1_i32 = arith.constant 1 : i32
    %3 = vector.broadcast %c1_i32 : i32 to vector<16x128xi32>
    %4 = arith.cmpi eq, %2, %3 : vector<16x128xi32>
    %5 = math.absf %1 : vector<16x128xf32>
    %cst_3 = arith.constant 0.000000e+00 : f32
    %6 = vector.broadcast %cst_3 : f32 to vector<16x128xf32>
    %7 = arith.subf %6, %5 : vector<16x128xf32>
    %8 = math.exp %7 : vector<16x128xf32>
    %9 = math.log1p %8 : vector<16x128xf32>
    %cst_4 = arith.constant 0.000000e+00 : f32
    %10 = vector.broadcast %cst_4 : f32 to vector<16x128xf32>
    %11 = arith.cmpf oge, %1, %10 : vector<16x128xf32>
    %cst_5 = arith.constant 0.000000e+00 : f32
    %12 = vector.broadcast %cst_5 : f32 to vector<16x128xf32>
    %13 = arith.subf %12, %9 : vector<16x128xf32>
    %14 = arith.subf %1, %9 : vector<16x128xf32>
    %15 = arith.select %11, %13, %14 : vector<16x128xi1>, vector<16x128xf32>
    %16 = arith.subf %15, %1 : vector<16x128xf32>
    %17 = arith.select %4, %15, %16 : vector<16x128xi1>, vector<16x128xf32>
    %18 = arith.select %4, %16, %15 : vector<16x128xi1>, vector<16x128xf32>
    %19 = math.exp %18 : vector<16x128xf32>
    %cst_6 = arith.constant -2.500000e-01 : f32
    %cst_7 = arith.constant -7.500000e-01 : f32
    %20 = vector.broadcast %cst_6 : f32 to vector<16x128xf32>
    %21 = vector.broadcast %cst_7 : f32 to vector<16x128xf32>
    %22 = arith.select %4, %20, %21 : vector<16x128xi1>, vector<16x128xf32>
    %23 = arith.mulf %19, %19 : vector<16x128xf32>
    %24 = arith.mulf %22, %23 : vector<16x128xf32>
    %25 = arith.mulf %24, %17 : vector<16x128xf32>
    %26 = vector.extract_strided_slice %25 {offsets = [0, 0], sizes = [8, 128], strides = [1, 1]} : vector<16x128xf32> to vector<8x128xf32>
    %27 = vector.extract_strided_slice %25 {offsets = [8, 0], sizes = [8, 128], strides = [1, 1]} : vector<16x128xf32> to vector<8x128xf32>
    %28 = arith.addf %26, %27 : vector<8x128xf32>
    %29 = arith.addf %0, %28 : vector<8x128xf32>
    %c0_8 = arith.constant 0 : index
    %c0_9 = arith.constant 0 : index
    %30 = vector.load %arg3[%c0_8, %c0_9] : memref<8x128xf32, #tpu.memory_space<vmem>>, vector<8x128xf32>
    tpu.vector_store %arg3[%c0_8, %c0_9], %29 {strides = array<i32>} : memref<8x128xf32, #tpu.memory_space<vmem>>, vector<8x128xf32>,
    return
  }
  func.func @transform_0(%arg0: i32) -> (i32, i32) {
    %c0_i32 = arith.constant 0 : i32
    %c0_i32_0 = arith.constant 0 : i32
    return %arg0, %c0_i32 : i32, i32
  }
  func.func @transform_1(%arg0: i32) -> (i32, i32) {
    %c0_i32 = arith.constant 0 : i32
    %c0_i32_0 = arith.constant 0 : i32
    return %arg0, %c0_i32 : i32, i32
  }
  func.func @transform_2(%arg0: i32) -> (i32, i32) {
    %c0_i32 = arith.constant 0 : i32
    %c0_i32_0 = arith.constant 0 : i32
    return %arg0, %c0_i32 : i32, i32
  }
}

</mosaic_0001>

<bundles_post_ra>
// kernel: tpu_custom_call.1
= control target key start
LH: loop header
LB: loop body
LE: loop exit
PB: predicated region body
PF: predicated region fallthrough
CT: control target
= control target key end

     0   :  { %7 = vsyncpa [#allocation3], 0  ;;  %s255_s0 = inlined_call_operand.hbm [shape: f32[16,128], index: 0, kind: input, shape index: {}]   ;;  %s256_s1 = inlined_call_operand.hbm [shape: s32[16,128], index: 1, kind: input, shape index: {}]   ;;  %s257_s2 = inlined_call_operand.hbm [shape: f32[8,128], index: 2, kind: output, shape index: {}]  }
   0x1   :  { %8 = vsyncpa [#allocation6], 0 }
   0x2   :  { %9 = vsyncpa [#allocation4], 0  ;;  %s14_s11 = sshll.u32 %s255_s0, 4  ;;  %s219_s12 = smov [#allocation2]   ;;  %s15_s11 = int_to_ptr.hbm [resolvable:$true] %s14_s11 }
   0x3   :  { %s16_s13 = sshll.u32 %s219_s12, 4  ;;  %s27_s16 = sshll.u32 %s256_s1, 4  ;;  %s17_s13 = int_to_ptr.vmem [resolvable:$true] %s16_s13  ;;  %s28_s16 = int_to_ptr.hbm [resolvable:$true] %s27_s16 }
   0x4   :  { %s220_s17 = smov 128   ;;  %s221_s18 = smov 8  }
   0x5   :  { %22 = dma.hbm_to_vmem [thread:$0]  %s15_s11, 256, %s17_s13, [#allocation3], %s220_s17, %s220_s17, %s221_s18  }
   0x6   :  { %s222_s19 = smov [#allocation5]  }
   0x7   :  { %s29_s20 = sshll.u32 %s222_s19, 4  ;;  %s30_s20 = int_to_ptr.vmem [resolvable:$true] %s29_s20 }
   0x8   :  { %35 = dma.hbm_to_vmem [thread:$0]  %s28_s16, 256, %s30_s20, [#allocation6], %s220_s17, %s220_s17, %s221_s18  }
   0x9   :  { %213 = dma.done.wait [#allocation3], 256  }
   0xa   :  { %214 = vsyncadd [#allocation3], 4294967040 }
   0xb   :  { %215 = dma.done.wait [#allocation6], 256  }
   0xc   :  { %216 = vsyncadd [#allocation6], 4294967040  ;;  %v44_v0 = vld [vmem:[#allocation2] sm:$0xff]  ;;  %v45_v1 = vld [vmem:[#allocation2 + $0x8] sm:$0xff]  ;;  %v223_v41 = vmov -0.75   ;;  %s224_s0 = smov [#allocation7]  }
   0xd   :  { %v50_v2 = vand.u32 2147483647, %v44_v0  ;;  %v51_v3 = vand.u32 2147483647, %v45_v1  ;;  %v46_v24 = vld [vmem:[#allocation5] sm:$0xff]  ;;  %vm76_vm2 = vcmp.ge.f32.partialorder %v44_v0, 0.0 }
   0xe   :  { %v47_v26 = vld [vmem:[#allocation5 + $0x8] sm:$0xff]  ;;  %vm77_vm3 = vcmp.ge.f32.partialorder %v45_v1, 0.0  ;;  %vm48_vm4 = vcmp.eq.s32.totalorder %v46_v24, 1  ;;  %s110_s1 = sshll.u32 %s224_s0, 4  ;;  %s112_s23 = sshll.u32 %s257_s2, 4  ;;  %s111_s1 = int_to_ptr.vmem [resolvable:$true] %s110_s1  ;;  %s113_s23 = int_to_ptr.hbm [resolvable:$true] %s112_s23 }
   0xf   :  { %v52_v4 = vsub.f32 0.0, %v50_v2  ;;  %v53_v5 = vsub.f32 0.0, %v51_v3  ;;  %vm49_vm5 = vcmp.eq.s32.totalorder %v47_v26, 1  ;;  %v94_v42 = vsel %vm48_vm4, -0.25, %v223_v41 }
  0x10   :  { %v95_v44 = vsel %vm49_vm5, -0.25, %v223_v41 }
  0x11   :  { %v54_v6 = vmul.f32 1.442695, %v52_v4  ;;  %v56_v7 = vmul.f32 1.442695, %v53_v5 }
  0x13   :  { %129 = vpow2.f32 %v54_v6 }
  0x14   :  { %131 = vpow2.f32 %v56_v7 }
  0x19   :  { %v130_v8 = vpop.eup %129 }
  0x1a   :  { %v132_v9 = vpop.eup %131  ;;  %v58_v10 = vadd.f32 1.0, %v130_v8  ;;  %v61_v11 = vmul.f32 -0.5, %v130_v8  ;;  %v64_v15 = vand.u32 2147483647, %v130_v8 }
  0x1b   :  { %v67_v12 = vadd.f32 1.0, %v132_v9  ;;  %v70_v13 = vmul.f32 -0.5, %v132_v9  ;;  %v73_v17 = vand.u32 2147483647, %v132_v9 }
  0x1c   :  { %133 = vlog2.f32 %v58_v10  ;;  %v62_v14 = vadd.f32 1.0, %v61_v11  ;;  %vm65_vm0 = vcmp.lt.f32.partialorder %v64_v15, 0.0004427343 }
  0x1d   :  { %135 = vlog2.f32 %v67_v12  ;;  %v71_v16 = vadd.f32 1.0, %v70_v13  ;;  %vm74_vm1 = vcmp.lt.f32.partialorder %v73_v17, 0.0004427343 }
  0x1e   :  { %v63_v18 = vmul.f32 %v130_v8, %v62_v14 }
  0x1f   :  { %v72_v20 = vmul.f32 %v132_v9, %v71_v16 }
  0x22   :  { %v134_v19 = vpop.eup %133 }
  0x23   :  { %v136_v21 = vpop.eup %135  ;;  %v60_v22 = vmul.f32 0.6931472, %v134_v19 }
  0x24   :  { %v69_v23 = vmul.f32 0.6931472, %v136_v21 }
  0x25   :  { %v66_v25 = vsel %vm65_vm0, %v63_v18, %v60_v22 }
  0x26   :  { %v75_v27 = vsel %vm74_vm1, %v72_v20, %v69_v23  ;;  %v78_v28 = vsub.f32 0.0, %v66_v25  ;;  %v80_v29 = vsub.f32 %v44_v0, %v66_v25 }
  0x27   :  { %v79_v30 = vsub.f32 0.0, %v75_v27  ;;  %v81_v31 = vsub.f32 %v45_v1, %v75_v27 }
  0x28   :  { %v82_v32 = vsel %vm76_vm2, %v78_v28, %v80_v29 }
  0x29   :  { %v83_v33 = vsel %vm77_vm3, %v79_v30, %v81_v31  ;;  %v84_v34 = vsub.f32 %v82_v32, %v44_v0 }
  0x2a   :  { %v85_v35 = vsub.f32 %v83_v33, %v45_v1 }
  0x2b   :  { %v88_v36 = vsel %vm48_vm4, %v84_v34, %v82_v32  ;;  %v86_v46 = vsel %vm48_vm4, %v82_v32, %v84_v34 }
  0x2c   :  { %v89_v37 = vsel %vm49_vm5, %v85_v35, %v83_v33  ;;  %v90_v38 = vmul.f32 1.442695, %v88_v36  ;;  %v87_v48 = vsel %vm49_vm5, %v83_v33, %v85_v35 }
  0x2d   :  { %v92_v39 = vmul.f32 1.442695, %v89_v37 }
  0x2e   :  { %137 = vpow2.f32 %v90_v38 }
  0x2f   :  { %139 = vpow2.f32 %v92_v39 }
  0x34   :  { %v138_v40 = vpop.eup %137 }
  0x35   :  { %v140_v43 = vpop.eup %139  ;;  %v96_v45 = vmul.f32 %v138_v40, %v138_v40 }
  0x36   :  { %v97_v47 = vmul.f32 %v140_v43, %v140_v43 }
  0x37   :  { %v98_v49 = vmul.f32 %v96_v45, %v94_v42 }
  0x38   :  { %v99_v50 = vmul.f32 %v97_v47, %v95_v44 }
  0x39   :  { %v100_v51 = vmul.f32 %v98_v49, %v86_v46 }
  0x3a   :  { %v101_v52 = vmul.f32 %v99_v50, %v87_v48 }
  0x3c   :  { %v102_v53 = vadd.f32 %v101_v52, %v100_v51 }
  0x3e   :  { %104 = vst [vmem:[#allocation7] sm:$0xff] %v102_v53 }
  0x3f   :  { %115 = dma.vmem_to_hbm [thread:$0]  %s111_s1, 128, %s113_s23, [#allocation4]  }
  0x40   :  { %217 = dma.done.wait [#allocation4], 128  }
  0x41   :  { %218 = vsyncadd [#allocation4], 4294967168 }
  0x42   :  { %120 = vsyncpa [#allocation3], 1 }
  0x43   :  { %121 = vsyncpa [#allocation6], 1 }
  0x44   :  { %122 = vsyncpa [#allocation4], 1 }

</bundles_post_ra>
